<compile_context>
chip_gen: v6e
topology: v6e:2x2x1
jax: 0.10.0
libtpu: 0.0.40
codegen_flags: <defaults>
</compile_context>

<pallas_src>
import jax
import jax.numpy as jnp
from jax.experimental import pallas as pl
from jax.experimental.pallas import tpu as pltpu


def _fc_kernel(x_ref, w_ref, b_ref, o_ref):
    # x_ref: (tm, F)   w_ref: (F, C)   b_ref: (1, C)   o_ref: (tm, C)
    y = jnp.dot(x_ref[...], w_ref[...], preferred_element_type=jnp.float32)
    o_ref[...] = (y + b_ref[...]).astype(o_ref.dtype)


def _round_up(x, m):
    return (x + m - 1) // m * m


@jax.jit
def fc_prediction(x, weight, bias):
    """x: (B, T, F); weight: (C, F); bias: (C,) -> (B, T, C)."""
    B, T, F = x.shape
    C = weight.shape[0]
    M = B * T

    x2d = x.reshape(M, F)
    w_t = weight.T                      # (F, C): plain matmul inside the kernel
    b2d = bias.reshape(1, C)

    # Row-tile size: large (amortizes the ~0.35us per-step overhead and keeps
    # the kernel at the HBM roofline) but never larger than the padded problem.
    # Must be a multiple of 8 (sublane granularity). (tm, F) f32 tiles are tiny
    # (2048 x 32 x 4B = 256 KiB), so double-buffering fits all VMEM budgets.
    tm = min(2048, _round_up(M, 8))
    M_pad = _round_up(M, tm)
    if M_pad != M:
        x2d = jnp.pad(x2d, ((0, M_pad - M), (0, 0)))

    grid = (M_pad // tm,)

    itemsize = x.dtype.itemsize
    cost = pl.CostEstimate(
        flops=2 * M_pad * F * C,
        transcendentals=0,
        bytes_accessed=(M_pad * F + F * C + C + M_pad * C) * itemsize,
    )

    out2d = pl.pallas_call(
        _fc_kernel,
        out_shape=jax.ShapeDtypeStruct((M_pad, C), x.dtype),
        grid_spec=pltpu.PrefetchScalarGridSpec(
            num_scalar_prefetch=0,
            grid=grid,
            in_specs=[
                pl.BlockSpec((tm, F), lambda i: (i, 0)),   # streamed row tiles
                pl.BlockSpec((F, C), lambda i: (0, 0)),    # VMEM-resident W^T
                pl.BlockSpec((1, C), lambda i: (0, 0)),    # VMEM-resident bias
            ],
            out_specs=pl.BlockSpec((tm, C), lambda i: (i, 0)),
        ),
        compiler_params=pltpu.CompilerParams(
            dimension_semantics=("parallel",),  # shard row tiles across TCs (v7x)
        ),
        cost_estimate=cost,
    )(x2d, w_t, b2d)

    return out2d[:M].reshape(B, T, C)


if __name__ == "__main__":
    # Shapes implied by the forward: x is (batch, clip_len, feat_dim).
    batch, clip_len, feat_dim, num_classes = 2, 8, 32, 10

    key = jax.random.PRNGKey(0)
    kx, kw, kb = jax.random.split(key, 3)

    x = jax.random.normal(kx, (batch, clip_len, feat_dim), dtype=jnp.float32)

    # Deterministic nn.Linear-style init: U(-1/sqrt(fan_in), 1/sqrt(fan_in)).
    bound = 1.0 / (feat_dim ** 0.5)
    weight = jax.random.uniform(
        kw, (num_classes, feat_dim), minval=-bound, maxval=bound,
        dtype=jnp.float32)
    bias = jax.random.uniform(
        kb, (num_classes,), minval=-bound, maxval=bound, dtype=jnp.float32)

    out = fc_prediction(x, weight, bias)
    jax.block_until_ready(out)

    # Reference check against plain JAX (same semantics as the torch module).
    ref = (x.reshape(batch * clip_len, feat_dim) @ weight.T + bias).reshape(
        batch, clip_len, num_classes)
    assert out.shape == (batch, clip_len, num_classes)
    assert jnp.allclose(out, ref, atol=1e-5, rtol=1e-5)

    # Also exercise a larger, non-divisible M to verify tiling + padding path.
    B2, T2 = 7, 513   # M = 3591, not a multiple of tm
    x_big = jax.random.normal(kx, (B2, T2, feat_dim), dtype=jnp.float32)
    out_big = fc_prediction(x_big, weight, bias)
    jax.block_until_ready(out_big)
    ref_big = (x_big.reshape(B2 * T2, feat_dim) @ weight.T + bias).reshape(
        B2, T2, num_classes)
    assert jnp.allclose(out_big, ref_big, atol=1e-5, rtol=1e-5)

    print("KERNEL_OK")
</pallas_src>

<mosaic_0001>
module attributes {stable_mosaic.version = 11 : i64} {
  func.func @_fc_kernel(%arg0: i32, %arg1: memref<16x32xf32, #tpu.memory_space<vmem>>, %arg2: memref<32x10xf32, #tpu.memory_space<vmem>>, %arg3: memref<1x10xf32, #tpu.memory_space<vmem>>, %arg4: memref<16x10xf32, #tpu.memory_space<vmem>>) attributes {dimension_semantics = [#tpu.dimension_semantics<parallel>], iteration_bounds = array<i64: 1>, scalar_prefetch = 0 : i64, scratch_operands = 0 : i64, tpu.core_type = #tpu.core_type<tc>, window_params = [{transform_indices = @transform_0, window_bounds = array<i64: 16, 32>}, {pipeline_mode = #tpu.pipeline_mode<synchronous>, transform_indices = @transform_1, window_bounds = array<i64: 32, 10>}, {pipeline_mode = #tpu.pipeline_mode<synchronous>, transform_indices = @transform_2, window_bounds = array<i64: 1, 10>}, {transform_indices = @transform_3, window_bounds = array<i64: 16, 10>}]} {
    %c0 = arith.constant 0 : index
    %c0_0 = arith.constant 0 : index
    %0 = vector.load %arg1[%c0, %c0_0] : memref<16x32xf32, #tpu.memory_space<vmem>>, vector<16x32xf32>
    %c0_1 = arith.constant 0 : index
    %c0_2 = arith.constant 0 : index
    %1 = vector.load %arg2[%c0_1, %c0_2] : memref<32x10xf32, #tpu.memory_space<vmem>>, vector<32x10xf32>
    %cst = arith.constant dense<0.000000e+00> : vector<16x10xf32>
    %2 = tpu.matmul %0, %1, %cst {dimension_numbers = #tpu.dot_dimension_numbers<[1], [0], [0], [1], [0, 0, 1, 1], [], []>} : vector<16x32xf32>, vector<32x10xf32>, vector<16x10xf32> -> vector<16x10xf32>
    %c0_3 = arith.constant 0 : index
    %c0_4 = arith.constant 0 : index
    %3 = vector.load %arg3[%c0_3, %c0_4] : memref<1x10xf32, #tpu.memory_space<vmem>>, vector<1x10xf32>
    %4 = vector.broadcast %3 : vector<1x10xf32> to vector<16x10xf32>
    %5 = arith.addf %2, %4 : vector<16x10xf32>
    %c0_5 = arith.constant 0 : index
    %c0_6 = arith.constant 0 : index
    %6 = vector.load %arg4[%c0_5, %c0_6] : memref<16x10xf32, #tpu.memory_space<vmem>>, vector<16x10xf32>
    tpu.vector_store %arg4[%c0_5, %c0_6], %5 {strides = array<i32>} : memref<16x10xf32, #tpu.memory_space<vmem>>, vector<16x10xf32>,
    return
  }
  func.func @transform_0(%arg0: i32) -> (i32, i32) {
    %c0_i32 = arith.constant 0 : i32
    %c0_i32_0 = arith.constant 0 : i32
    return %arg0, %c0_i32 : i32, i32
  }
  func.func @transform_1(%arg0: i32) -> (i32, i32) {
    %c0_i32 = arith.constant 0 : i32
    %c0_i32_0 = arith.constant 0 : i32
    %c0_i32_1 = arith.constant 0 : i32
    return %c0_i32, %c0_i32_0 : i32, i32
  }
  func.func @transform_2(%arg0: i32) -> (i32, i32) {
    %c0_i32 = arith.constant 0 : i32
    %c0_i32_0 = arith.constant 0 : i32
    %c0_i32_1 = arith.constant 0 : i32
    return %c0_i32, %c0_i32_0 : i32, i32
  }
  func.func @transform_3(%arg0: i32) -> (i32, i32) {
    %c0_i32 = arith.constant 0 : i32
    %c0_i32_0 = arith.constant 0 : i32
    return %arg0, %c0_i32 : i32, i32
  }
}

</mosaic_0001>

<bundles_post_ra>
// kernel: fc_prediction.1
= control target key start
LH: loop header
LB: loop body
LE: loop exit
PB: predicated region body
PF: predicated region fallthrough
CT: control target
= control target key end

     0   :  { %vm28_vm0 = vcmask 261120   ;;  %s221_s0 = inlined_call_operand.vmem [shape: f32[16,32], index: 0, kind: input, shape index: {}]   ;;  %s222_s1 = inlined_call_operand.vmem [shape: f32[32,10], index: 1, kind: input, shape index: {}]   ;;  %s223_s2 = inlined_call_operand.vmem [shape: f32[1,10], index: 2, kind: input, shape index: {}]   ;;  %s224_s3 = inlined_call_operand.hbm [shape: f32[16,10], index: 3, kind: output, shape index: {}]  }
   0x1   :  { %v20_v0 = vld [vmem:[%s222_s1 + $0x18] sm:$0xff]  ;;  %v19_v1 = vld [vmem:[%s222_s1 + $0x10] sm:$0xff]  ;;  %v15_v2 = vld [vmem:[%s221_s0] sm:$0xff] }
   0x2   :  { %138 = vmatprep.subr.mxu0 %v20_v0  ;;  %v18_v3 = vld [vmem:[%s222_s1 + $0x8] sm:$0xff]  ;;  %146 = vmatprep.mubr.msk.f32.mxu0 %vm28_vm0, %v15_v2 }
   0x3   :  { %139 = vmatpush3.msra.mxu0 %v20_v0 }
   0x4   :  { %8 = vsyncpa [#allocation3], 0  ;;  %140 = vmatprep.subr.mxu0 %v19_v1  ;;  %v17_v4 = vld [vmem:[%s222_s1] sm:$0xff]  ;;  %v16_v5 = vld [vmem:[%s221_s0 + $0x8] sm:$0xff]  ;;  %s174_s26 = smov [#allocation2]   ;;  %vm110_vm1 = vcmask 80896  }
   0x5   :  { %141 = vmatpush3.msra.mxu0 %v19_v1  ;;  %v129_v6 = vld [vmem:[%s223_s2] ss:$0 sm:$0xff]  ;;  %s118_s27 = sshll.u32 %s174_s26, 4  ;;  %s119_s27 = int_to_ptr.vmem [resolvable:$true] %s118_s27 }
   0x6   :  { %142 = vmatprep.subr.mxu0 %v18_v3  ;;  %s152_s1 = scalar_lea.vmem %s119_s27, 256  ;;  %p157_p1 = scmp.lt.s32.totalorder %s119_s27, %s119_s27 }
   0x7   :  { %143 = vmatpush3.msra.mxu0 %v18_v3  ;;  %p153_p0 = scmp.ne.s32.totalorder %s119_s27, %s152_s1  ;;  %p158_p2 = scmp.lt.s32.totalorder %s152_s1, %s152_s1 }
   0x8   :  { %144 = vmatprep.subr.mxu0 %v17_v4 }
   0x9   :  { %145 = vmatpush3.msra.mxu0 %v17_v4  ;;  %p159_p3 = por %p158_p2, %p157_p1 }
   0xa   :  { %147 = vmatmul.mubr.msk.f32.vlgmr.msra.gmra.mxu0 %vm28_vm0, %v16_v5 }
   0xb   :  { %p160_p4 = pnand %p159_p3, %p153_p0 }
  0xca   :  { %v148_v7 = vpop.f32.mrf.mxu0 }
  0xcb   :  { %v107_v8 = vadd.f32 %v148_v7, %v129_v6 }
  0xcc   :  { %v101_v9 = vpop.f32.mrf.mxu0 }
  0xcd   :  { %112 = vst.msk [vmem:[#allocation2 + $0x8] sm:$0xff] %vm110_vm1, %v107_v8  ;;  %v102_v10 = vadd.f32 %v129_v6, %v101_v9 }
  0xcf   :  { %111 = vst.msk [vmem:[#allocation2] sm:$0xff] %vm110_vm1, %v102_v10 }
  0xd0   :  { %163 = shalt.err (!%p160_p4)
}
  0xd1   :  { %s175_s0 = smov 128   ;;  %s176_s28 = smov 8  }
  0xd2   :  { %124 = dma.vmem_to_hbm [thread:$0]  %s119_s27, 256, %s224_s3, [#allocation3], %s175_s0, %s175_s0, %s176_s28  }
  0xd3   :  { %172 = dma.done.wait [#allocation3], 256  }
  0xd4   :  { %173 = vsyncadd [#allocation3], 4294967040 }
  0xd5   :  { %128 = vsyncpa [#allocation3], 1 }

</bundles_post_ra>
